<compile_context>
chip_gen: v5e
topology: v5e:2x2
jax: 0.10.0
libtpu: 0.0.40
codegen_flags: <defaults>
</compile_context>

<pallas_src>
import jax
import jax.numpy as jnp
from jax import lax
from jax.experimental import pallas as pl
from jax.experimental.pallas import tpu as pltpu


def _matmul_nt(a, b):
    # a: (M, K), b: (N, K)  ->  (M, N), contracting the last dim of both operands.
    return lax.dot_general(
        a, b,
        dimension_numbers=(((1,), (1,)), ((), ())),
        preferred_element_type=jnp.float32,
    )


def attention_mine_kernel(x_ref, w1_ref, w2_ref, w3_ref, b3_ref, w4_ref, b4_ref, o_ref):
    x = x_ref[...]                                           # (Bb, C, HW) f32

    # ---- channel attention: mean over spatial -> fc1 -> relu -> fc2 -> sigmoid
    ch_mean = jnp.mean(x, axis=2)                            # (Bb, C)
    h = _matmul_nt(ch_mean, w1_ref[...])                     # (Bb, C15)   w1: (C15, C)
    h = jnp.maximum(h, 0.0)
    s_ch = jax.nn.sigmoid(_matmul_nt(h, w2_ref[...]))        # (Bb, C)     w2: (C, C15)

    # ---- spatial attention: mean over channels -> fc3 -> relu -> fc4 -> sigmoid
    sp_mean = jnp.mean(x, axis=1)                            # (Bb, HW)
    h2 = _matmul_nt(sp_mean, w3_ref[...]) + b3_ref[...]      # (Bb, HW16)  w3: (HW16, HW)
    h2 = jnp.maximum(h2, 0.0)
    s_sp = jax.nn.sigmoid(_matmul_nt(h2, w4_ref[...]) + b4_ref[...])  # (Bb, HW)  w4: (HW, HW16)

    # ---- fused apply: x*s_ch + x*s_sp == x * (s_ch + s_sp)
    o_ref[...] = x * (s_ch[:, :, None] + s_sp[:, None, :])


def _pick_block_b(B, C, HW, vmem_block_budget_bytes=8 * 1024 * 1024):
    """Largest divisor of B such that 4x double-buffered (in+out) blocks fit the budget,
    keeping >= 2 grid steps when B >= 2 (so both v7x TensorCores get work)."""
    per_b = C * HW * 4                       # bytes of one batch element, f32
    max_bb = max(1, vmem_block_budget_bytes // (4 * per_b))
    if B >= 2:
        max_bb = min(max_bb, max(1, B // 2))
    max_bb = min(max_bb, B)
    bb = 1
    for d in range(1, max_bb + 1):
        if B % d == 0:
            bb = d
    return bb


def attention_mine_pallas(x, w1, w2, w3, b3, w4, b4):
    """x: (B, C, H, W) f32.
    Conv1x1 weights (bias=False), squeezed: w1:(C//15, C), w2:(C, C//15).
    Linear weights (PyTorch convention y = x @ W.T + b): w3:(HW//16, HW), b3:(HW//16,),
    w4:(HW, HW//16), b4:(HW,)."""
    B, C, H, W = x.shape
    HW = H * W
    C15 = w1.shape[0]
    HW16 = w3.shape[0]

    x2 = x.reshape(B, C, HW)
    b3r = b3.reshape(1, HW16)
    b4r = b4.reshape(1, HW)

    bb = _pick_block_b(B, C, HW)
    grid_b = B // bb

    out = pl.pallas_call(
        attention_mine_kernel,
        out_shape=jax.ShapeDtypeStruct((B, C, HW), jnp.float32),
        grid_spec=pltpu.PrefetchScalarGridSpec(
            num_scalar_prefetch=0,
            grid=(grid_b,),
            in_specs=[
                pl.BlockSpec((bb, C, HW), lambda b: (b, 0, 0)),   # x (batched block)
                pl.BlockSpec((C15, C), lambda b: (0, 0)),         # w1 (native layout)
                pl.BlockSpec((C, C15), lambda b: (0, 0)),         # w2 (native layout)
                pl.BlockSpec((HW16, HW), lambda b: (0, 0)),       # w3 (HW lane-dense)
                pl.BlockSpec((1, HW16), lambda b: (0, 0)),        # b3
                pl.BlockSpec((HW, HW16), lambda b: (0, 0)),       # w4 (native layout)
                pl.BlockSpec((1, HW), lambda b: (0, 0)),          # b4
            ],
            out_specs=pl.BlockSpec((bb, C, HW), lambda b: (b, 0, 0)),
        ),
        compiler_params=pltpu.CompilerParams(
            dimension_semantics=("parallel",),
            vmem_limit_bytes=32 * 1024 * 1024,
        ),
    )(x2, w1, w2, w3, b3r, w4, b4r)

    return out.reshape(B, C, H, W)


def attention_mine_ref(x, w1, w2, w3, b3, w4, b4):
    """Pure-JAX reference mirroring the PyTorch forward exactly."""
    B, C, H, W = x.shape
    HW = H * W
    # channel branch
    s = x.mean(axis=(2, 3), keepdims=True)                    # (B, C, 1, 1)
    s = jnp.maximum(jnp.einsum('oc,bcij->boij', w1, s), 0.0)  # fc1 (1x1 conv, no bias)
    s = jax.nn.sigmoid(jnp.einsum('oc,bcij->boij', w2, s))    # fc2
    out1 = x * s
    # spatial branch
    t = x.mean(axis=1, keepdims=True).reshape(B, HW)
    t = jnp.maximum(t @ w3.T + b3, 0.0)                       # fc3
    t = jax.nn.sigmoid(t @ w4.T + b4)                         # fc4
    out2 = x * t.reshape(B, 1, H, W)
    return out1 + out2


if __name__ == "__main__":
    B, C, H, W = 8, 30, 16, 16          # in_planes=30 (divisible by 15), layer_size=(16,16)
    HW = H * W                           # in_size = 256
    C15 = C // 15                        # 2
    HW16 = HW // 16                      # 16

    key = jax.random.PRNGKey(0)
    kx, k1, k2, k3, kb3, k4, kb4 = jax.random.split(key, 7)

    x = jax.random.normal(kx, (B, C, H, W), dtype=jnp.float32)
    # conv1x1 weights (bias=False), stored squeezed as (out, in)
    w1 = 0.1 * jax.random.normal(k1, (C15, C), dtype=jnp.float32)
    w2 = 0.1 * jax.random.normal(k2, (C, C15), dtype=jnp.float32)
    # Linear weights (out, in) + bias, PyTorch convention y = x @ W.T + b
    w3 = 0.1 * jax.random.normal(k3, (HW16, HW), dtype=jnp.float32)
    b3 = 0.1 * jax.random.normal(kb3, (HW16,), dtype=jnp.float32)
    w4 = 0.1 * jax.random.normal(k4, (HW, HW16), dtype=jnp.float32)
    b4 = 0.1 * jax.random.normal(kb4, (HW,), dtype=jnp.float32)

    out = attention_mine_pallas(x, w1, w2, w3, b3, w4, b4)
    out = jax.block_until_ready(out)

    ref = attention_mine_ref(x, w1, w2, w3, b3, w4, b4)
    assert out.shape == (B, C, H, W)
    assert jnp.allclose(out, ref, atol=1e-4, rtol=1e-4), float(jnp.max(jnp.abs(out - ref)))

    print("KERNEL_OK")
</pallas_src>

<mosaic_0001>
module attributes {stable_mosaic.version = 11 : i64} {
  func.func @attention_mine_kernel(%arg0: i32, %arg1: memref<4x30x256xf32, #tpu.memory_space<vmem>>, %arg2: memref<2x30xf32, #tpu.memory_space<vmem>>, %arg3: memref<30x2xf32, #tpu.memory_space<vmem>>, %arg4: memref<16x256xf32, #tpu.memory_space<vmem>>, %arg5: memref<1x16xf32, #tpu.memory_space<vmem>>, %arg6: memref<256x16xf32, #tpu.memory_space<vmem>>, %arg7: memref<1x256xf32, #tpu.memory_space<vmem>>, %arg8: memref<4x30x256xf32, #tpu.memory_space<vmem>>) attributes {dimension_semantics = [#tpu.dimension_semantics<parallel>], iteration_bounds = array<i64: 2>, scalar_prefetch = 0 : i64, scratch_operands = 0 : i64, tpu.core_type = #tpu.core_type<tc>, window_params = [{transform_indices = @transform_0, window_bounds = array<i64: 4, 30, 256>}, {pipeline_mode = #tpu.pipeline_mode<synchronous>, transform_indices = @transform_1, window_bounds = array<i64: 2, 30>}, {pipeline_mode = #tpu.pipeline_mode<synchronous>, transform_indices = @transform_2, window_bounds = array<i64: 30, 2>}, {pipeline_mode = #tpu.pipeline_mode<synchronous>, transform_indices = @transform_3, window_bounds = array<i64: 16, 256>}, {pipeline_mode = #tpu.pipeline_mode<synchronous>, transform_indices = @transform_4, window_bounds = array<i64: 1, 16>}, {pipeline_mode = #tpu.pipeline_mode<synchronous>, transform_indices = @transform_5, window_bounds = array<i64: 256, 16>}, {pipeline_mode = #tpu.pipeline_mode<synchronous>, transform_indices = @transform_6, window_bounds = array<i64: 1, 256>}, {transform_indices = @transform_7, window_bounds = array<i64: 4, 30, 256>}]} {
    %c0 = arith.constant 0 : index
    %c0_0 = arith.constant 0 : index
    %c0_1 = arith.constant 0 : index
    %0 = vector.load %arg1[%c0, %c0_0, %c0_1] : memref<4x30x256xf32, #tpu.memory_space<vmem>>, vector<4x30x256xf32>
    %cst = arith.constant dense<0.000000e+00> : vector<4x30xf32>
    %1 = vector.multi_reduction <add>, %0, %cst [2] : vector<4x30x256xf32> to vector<4x30xf32>
    %cst_2 = arith.constant 2.560000e+02 : f32
    %2 = vector.broadcast %cst_2 : f32 to vector<4x30xf32>
    %3 = arith.divf %1, %2 : vector<4x30xf32>
    %c0_3 = arith.constant 0 : index
    %c0_4 = arith.constant 0 : index
    %4 = vector.load %arg2[%c0_3, %c0_4] : memref<2x30xf32, #tpu.memory_space<vmem>>, vector<2x30xf32>
    %cst_5 = arith.constant dense<0.000000e+00> : vector<4x2xf32>
    %5 = tpu.matmul %3, %4, %cst_5 {dimension_numbers = #tpu.dot_dimension_numbers<[1], [1], [0], [0], [0, 0, 1, 0], [], []>} : vector<4x30xf32>, vector<2x30xf32>, vector<4x2xf32> -> vector<4x2xf32>
    %cst_6 = arith.constant 0.000000e+00 : f32
    %6 = vector.broadcast %cst_6 : f32 to vector<4x2xf32>
    %7 = arith.maximumf %5, %6 : vector<4x2xf32>
    %c0_7 = arith.constant 0 : index
    %c0_8 = arith.constant 0 : index
    %8 = vector.load %arg3[%c0_7, %c0_8] : memref<30x2xf32, #tpu.memory_space<vmem>>, vector<30x2xf32>
    %cst_9 = arith.constant dense<0.000000e+00> : vector<4x30xf32>
    %9 = tpu.matmul %7, %8, %cst_9 {dimension_numbers = #tpu.dot_dimension_numbers<[1], [1], [0], [0], [0, 0, 1, 0], [], []>} : vector<4x2xf32>, vector<30x2xf32>, vector<4x30xf32> -> vector<4x30xf32>
    %10 = arith.negf %9 : vector<4x30xf32>
    %11 = math.exp %10 : vector<4x30xf32>
    %cst_10 = arith.constant 1.000000e+00 : f32
    %12 = vector.broadcast %cst_10 : f32 to vector<4x30xf32>
    %13 = arith.addf %12, %11 : vector<4x30xf32>
    %14 = arith.divf %12, %13 : vector<4x30xf32>
    %cst_11 = arith.constant dense<0.000000e+00> : vector<4x256xf32>
    %15 = vector.multi_reduction <add>, %0, %cst_11 [1] : vector<4x30x256xf32> to vector<4x256xf32>
    %cst_12 = arith.constant 3.000000e+01 : f32
    %16 = vector.broadcast %cst_12 : f32 to vector<4x256xf32>
    %17 = arith.divf %15, %16 : vector<4x256xf32>
    %c0_13 = arith.constant 0 : index
    %c0_14 = arith.constant 0 : index
    %18 = vector.load %arg4[%c0_13, %c0_14] : memref<16x256xf32, #tpu.memory_space<vmem>>, vector<16x256xf32>
    %cst_15 = arith.constant dense<0.000000e+00> : vector<4x16xf32>
    %19 = tpu.matmul %17, %18, %cst_15 {dimension_numbers = #tpu.dot_dimension_numbers<[1], [1], [0], [0], [0, 0, 1, 0], [], []>} : vector<4x256xf32>, vector<16x256xf32>, vector<4x16xf32> -> vector<4x16xf32>
    %c0_16 = arith.constant 0 : index
    %c0_17 = arith.constant 0 : index
    %20 = vector.load %arg5[%c0_16, %c0_17] : memref<1x16xf32, #tpu.memory_space<vmem>>, vector<1x16xf32>
    %21 = vector.broadcast %20 : vector<1x16xf32> to vector<4x16xf32>
    %22 = arith.addf %19, %21 : vector<4x16xf32>
    %cst_18 = arith.constant 0.000000e+00 : f32
    %23 = vector.broadcast %cst_18 : f32 to vector<4x16xf32>
    %24 = arith.maximumf %22, %23 : vector<4x16xf32>
    %c0_19 = arith.constant 0 : index
    %c0_20 = arith.constant 0 : index
    %25 = vector.load %arg6[%c0_19, %c0_20] : memref<256x16xf32, #tpu.memory_space<vmem>>, vector<256x16xf32>
    %cst_21 = arith.constant dense<0.000000e+00> : vector<4x256xf32>
    %26 = tpu.matmul %24, %25, %cst_21 {dimension_numbers = #tpu.dot_dimension_numbers<[1], [1], [0], [0], [0, 0, 1, 0], [], []>} : vector<4x16xf32>, vector<256x16xf32>, vector<4x256xf32> -> vector<4x256xf32>
    %c0_22 = arith.constant 0 : index
    %c0_23 = arith.constant 0 : index
    %27 = vector.load %arg7[%c0_22, %c0_23] : memref<1x256xf32, #tpu.memory_space<vmem>>, vector<1x256xf32>
    %28 = vector.broadcast %27 : vector<1x256xf32> to vector<4x256xf32>
    %29 = arith.addf %26, %28 : vector<4x256xf32>
    %30 = arith.negf %29 : vector<4x256xf32>
    %31 = math.exp %30 : vector<4x256xf32>
    %cst_24 = arith.constant 1.000000e+00 : f32
    %32 = vector.broadcast %cst_24 : f32 to vector<4x256xf32>
    %33 = arith.addf %32, %31 : vector<4x256xf32>
    %34 = arith.divf %32, %33 : vector<4x256xf32>
    %35 = vector.shape_cast %14 : vector<4x30xf32> to vector<4x30x1xf32>
    %36 = vector.shape_cast %34 : vector<4x256xf32> to vector<4x1x256xf32>
    %37 = vector.broadcast %35 : vector<4x30x1xf32> to vector<4x30x256xf32>
    %38 = vector.broadcast %36 : vector<4x1x256xf32> to vector<4x30x256xf32>
    %39 = arith.addf %37, %38 : vector<4x30x256xf32>
    %40 = arith.mulf %0, %39 : vector<4x30x256xf32>
    %c0_25 = arith.constant 0 : index
    %c0_26 = arith.constant 0 : index
    %c0_27 = arith.constant 0 : index
    %41 = vector.load %arg8[%c0_25, %c0_26, %c0_27] : memref<4x30x256xf32, #tpu.memory_space<vmem>>, vector<4x30x256xf32>
    tpu.vector_store %arg8[%c0_25, %c0_26, %c0_27], %40 {strides = array<i32>} : memref<4x30x256xf32, #tpu.memory_space<vmem>>, vector<4x30x256xf32>,
    return
  }
  func.func @transform_0(%arg0: i32) -> (i32, i32, i32) {
    %c0_i32 = arith.constant 0 : i32
    %c0_i32_0 = arith.constant 0 : i32
    %c0_i32_1 = arith.constant 0 : i32
    return %arg0, %c0_i32, %c0_i32_0 : i32, i32, i32
  }
  func.func @transform_1(%arg0: i32) -> (i32, i32) {
    %c0_i32 = arith.constant 0 : i32
    %c0_i32_0 = arith.constant 0 : i32
    %c0_i32_1 = arith.constant 0 : i32
    return %c0_i32, %c0_i32_0 : i32, i32
  }
  func.func @transform_2(%arg0: i32) -> (i32, i32) {
    %c0_i32 = arith.constant 0 : i32
    %c0_i32_0 = arith.constant 0 : i32
    %c0_i32_1 = arith.constant 0 : i32
    return %c0_i32, %c0_i32_0 : i32, i32
  }
  func.func @transform_3(%arg0: i32) -> (i32, i32) {
    %c0_i32 = arith.constant 0 : i32
    %c0_i32_0 = arith.constant 0 : i32
    %c0_i32_1 = arith.constant 0 : i32
    return %c0_i32, %c0_i32_0 : i32, i32
  }
  func.func @transform_4(%arg0: i32) -> (i32, i32) {
    %c0_i32 = arith.constant 0 : i32
    %c0_i32_0 = arith.constant 0 : i32
    %c0_i32_1 = arith.constant 0 : i32
    return %c0_i32, %c0_i32_0 : i32, i32
  }
  func.func @transform_5(%arg0: i32) -> (i32, i32) {
    %c0_i32 = arith.constant 0 : i32
    %c0_i32_0 = arith.constant 0 : i32
    %c0_i32_1 = arith.constant 0 : i32
    return %c0_i32, %c0_i32_0 : i32, i32
  }
  func.func @transform_6(%arg0: i32) -> (i32, i32) {
    %c0_i32 = arith.constant 0 : i32
    %c0_i32_0 = arith.constant 0 : i32
    %c0_i32_1 = arith.constant 0 : i32
    return %c0_i32, %c0_i32_0 : i32, i32
  }
  func.func @transform_7(%arg0: i32) -> (i32, i32, i32) {
    %c0_i32 = arith.constant 0 : i32
    %c0_i32_0 = arith.constant 0 : i32
    %c0_i32_1 = arith.constant 0 : i32
    return %arg0, %c0_i32, %c0_i32_0 : i32, i32, i32
  }
}

</mosaic_0001>

<bundles_post_ra>
// kernel: tpu_custom_call.1
= control target key start
LH: loop header
LB: loop body
LE: loop exit
PB: predicated region body
PF: predicated region fallthrough
CT: control target
= control target key end

     0   :  { %s1357_s24 = smov 0   ;;  %s1887_s0 = inlined_call_operand.vmem [shape: f32[8,30,256], index: 0, kind: input, shape index: {}]   ;;  %s1888_s1 = inlined_call_operand.vmem [shape: f32[2,30], index: 1, kind: input, shape index: {}]   ;;  %s1889_s2 = inlined_call_operand.vmem [shape: f32[30,2], index: 2, kind: input, shape index: {}]   ;;  %s1890_s3 = inlined_call_operand.vmem [shape: f32[16,256], index: 3, kind: input, shape index: {}]   ;;  %s1891_s4 = inlined_call_operand.vmem [shape: f32[1,16], index: 4, kind: input, shape index: {}]   ;;  %s1892_s5 = inlined_call_operand.vmem [shape: f32[256,16], index: 5, kind: input, shape index: {}]   ;;  %s1893_s6 = inlined_call_operand.vmem [shape: f32[1,256], index: 6, kind: input, shape index: {}]   ;;  %s1894_s7 = inlined_call_operand.vmem [shape: f32[8,30,256], index: 7, kind: output, shape index: {}]  }
   0x1 LB: > { %s1193_s25 = sadd.s32 4294967295, %s1313_s24   ;;  %p1197_p0 = scmp.ge.s32.totalorder %s1313_s24, 1  ;;  %s1313_s24 = sphi %s1357_s24, %s17_s24  }
   0x2   : > { %p239_p1 = scmp.lt.s32.totalorder %s1313_s24, 3 }
   0x4   : > { %p240_p2 = pnand %p1197_p0, %p239_p1 }
   0x5   : > { %s1198_s26 = sshll.u32 (!%p240_p2), %s1193_s25, 2 }
   0x6   : > { %243 = sbr.rel (%p240_p2) target bundleno = 660 (0x294), region = 48  ;;  %p274_p3 = scmp.lt.s32.totalorder (!%p240_p2), %s1198_s26, 7 }
   0xb   : > { %s1896_s26 = smov (!%p274_p3, %s1198_s26), 7  ;;  %vm328_vm0 = vcmask 1045504   ;;  %vm458_vm1 = vcmask 244736   ;;  %vm489_vm2 = vcmask 15360   ;;  %vm421_vm4 = vcmask 130112  }
   0xc   : > { %s1250_s27 = sshll.u32 %s1896_s26, 6  ;;  %vm452_vm5 = vcmask 1041409   ;;  %vm454_vm6 = vcmask 1042434   ;;  %vm425_vm8 = vcmask 195712   ;;  %vm456_vm9 = vcmask 1043459  }
   0xd   : > { %s1373_s30 = scalar_lea.vmem %s1887_s0, %s1250_s27  ;;  %vm429_vm10 = vcmask 261312   ;;  %vm734_vm11 = vcmask 130048   ;;  %s1814_s20 = scalar_lea.vmem %s1894_s7, %s1250_s27 }
   0xe   : > { %v1376_v0 = vld [vmem:[%s1373_s30 + $0x40] sm:$0xff]  ;;  %v1379_v1 = vld [vmem:[%s1373_s30 + $0x48] sm:$0xff]  ;;  %v1400_v9 = vld [vmem:[%s1373_s30 + $0x50] sm:$0xff] }
   0xf   : > { %v1382_v2 = vld [vmem:[%s1373_s30 + $0x20] sm:$0xff]  ;;  %v334_v3 = vadd.f32 %v1379_v1, %v1376_v0  ;;  %v1387_v4 = vld [vmem:[%s1373_s30 + $0x28] sm:$0xff]  ;;  %v1403_v10 = vld [vmem:[%s1373_s30 + $0x58] sm:$0xff]  ;;  %v562_v56 = vadd.f32 %v1400_v9, %v1376_v0 }
  0x10   : > { %v1390_v5 = vld [vmem:[%s1373_s30] sm:$0xff]  ;;  %v1393_v6 = vld [vmem:[%s1373_s30 + $0x8] sm:$0xff]  ;;  %v325_v7 = vadd.f32 %v1387_v4, %v1382_v2  ;;  %v1412_v13 = vld [vmem:[%s1373_s30 + $0x10] sm:$0xff]  ;;  %v337_v15 = vadd.f32 %v1403_v10, %v1400_v9  ;;  %v571_v59 = vadd.f32 %v1403_v10, %v1379_v1 }
  0x11   : > { %v319_v8 = vadd.f32 %v1393_v6, %v1390_v5  ;;  %335 = vadd.xlane.f32.xlu1 %v334_v3  ;;  %v1406_v11 = vld [vmem:[%s1373_s30 + $0x60] sm:$0xff]  ;;  %v1409_v12 = vld [vmem:[%s1373_s30 + $0x68] sm:$0xff]  ;;  %v1415_v14 = vld [vmem:[%s1373_s30 + $0x18] sm:$0xff]  ;;  %v544_v57 = vadd.f32 %v1412_v13, %v1390_v5 }
  0x12   : > { %326 = vadd.xlane.f32.xlu2 %v325_v7  ;;  %v340_v16 = vadd.f32 %v1409_v12, %v1406_v11  ;;  %v322_v17 = vadd.f32 %v1415_v14, %v1412_v13  ;;  %v1424_v18 = vld [vmem:[%s1373_s30 + $0x30] sm:$0x3f]  ;;  %v1427_v19 = vld [vmem:[%s1373_s30 + $0x38] sm:$0x3f]  ;;  %v303_v24 = vld [vmem:[%s1373_s30 + $0x80] sm:$0xff]  ;;  %v553_v58 = vadd.f32 %v1415_v14, %v1393_v6  ;;  %v563_v63 = vadd.f32 %v562_v56, %v1406_v11 }
  0x13   : > { %320 = vadd.xlane.f32.xlu0 %v319_v8  ;;  %v1430_v20 = vld [vmem:[%s1373_s30 + $0x90] sm:$0xff]  ;;  %v1433_v21 = vld [vmem:[%s1373_s30 + $0x98] sm:$0xff]  ;;  %v329_v22 = vsel %vm328_vm0, %v1424_v18, 0.0  ;;  %v330_v23 = vsel %vm328_vm0, %v1427_v19, 0.0  ;;  %v304_v25 = vld [vmem:[%s1373_s30 + $0x88] sm:$0xff]  ;;  %v545_v61 = vadd.f32 %v544_v57, %v1382_v2  ;;  %v572_v7 = vadd.f32 %v571_v59, %v1409_v12 }
  0x14   : > { %v351_v26 = vadd.f32 %v1433_v21, %v1430_v20  ;;  %v331_v27 = vadd.f32 %v330_v23, %v329_v22  ;;  %v348_v28 = vadd.f32 %v304_v25, %v303_v24  ;;  %v1444_v29 = vld [vmem:[%s1373_s30 + $0x70] sm:$0x3f]  ;;  %v1447_v30 = vld [vmem:[%s1373_s30 + $0x78] sm:$0x3f]  ;;  %v1450_v31 = vld [vmem:[%s1373_s30 + $0xa0] sm:$0xff]  ;;  %v589_v60 = vadd.f32 %v1433_v21, %v304_v25 }
  0x15   : > { %v1453_v32 = vld [vmem:[%s1373_s30 + $0xa8] sm:$0xff]  ;;  %v343_v33 = vsel %vm328_vm0, %v1444_v29, 0.0  ;;  %v344_v34 = vsel %vm328_vm0, %v1447_v30, 0.0  ;;  %v311_v35 = vld [vmem:[%s1373_s30 + $0xc0] sm:$0xff]  ;;  %v309_v40 = vld [vmem:[%s1373_s30 + $0xb0] sm:$0x3f]  ;;  %v554_v62 = vadd.f32 %v553_v58, %v1387_v4  ;;  %v580_v3 = vadd.f32 %v1430_v20, %v303_v24 }
  0x16   : > { %v312_v36 = vld [vmem:[%s1373_s30 + $0xc8] sm:$0xff]  ;;  %v354_v37 = vadd.f32 %v1453_v32, %v1450_v31  ;;  %v345_v38 = vadd.f32 %v344_v34, %v343_v33  ;;  %v310_v41 = vld [vmem:[%s1373_s30 + $0xb8] sm:$0x3f]  ;;  %v357_v42 = vsel %vm328_vm0, %v309_v40, 0.0  ;;  %v313_v44 = vld [vmem:[%s1373_s30 + $0xd0] sm:$0xff]  ;;  %v590_v8 = vadd.f32 %v589_v60, %v1453_v32 }
  0x17   : > { %v362_v39 = vadd.f32 %v312_v36, %v311_v35  ;;  %v358_v43 = vsel %vm328_vm0, %v310_v41, 0.0  ;;  %v314_v45 = vld [vmem:[%s1373_s30 + $0xd8] sm:$0xff]  ;;  %v1470_v46 = vld [vmem:[%s1373_s30 + $0xe0] sm:$0xff]  ;;  %v1473_v47 = vld [vmem:[%s1373_s30 + $0xe8] sm:$0xff]  ;;  %v573_v25 = vadd.f32 %v572_v7, %v344_v34 }
  0x18   : > { %v359_v48 = vadd.f32 %v358_v43, %v357_v42  ;;  %v365_v49 = vadd.f32 %v314_v45, %v313_v44  ;;  %v368_v50 = vadd.f32 %v1473_v47, %v1470_v46  ;;  %v317_v51 = vld [vmem:[%s1373_s30 + $0xf0] sm:$0x3f]  ;;  %v318_v52 = vld [vmem:[%s1373_s30 + $0xf8] sm:$0x3f]  ;;  %v399_v7 = vld [vmem:[%s1888_s1] sm:$0x3] }
  0x19   : > { %338 = vadd.xlane.f32.xlu1 %v337_v15  ;;  %v371_v53 = vsel %vm328_vm0, %v317_v51, 0.0  ;;  %v372_v54 = vsel %vm328_vm0, %v318_v52, 0.0  ;;  %v607_v15 = vadd.f32 %v314_v45, %v312_v36  ;;  %1204 = vmatpush.xpose.msk.msra.mxu1 %vm458_vm1, %v399_v7 }
  0x1a   : > { %341 = vadd.xlane.f32.xlu2 %v340_v16  ;;  %v373_v55 = vadd.f32 %v372_v54, %v371_v53  ;;  %v1315_v16 = vmov 256.0  }
  0x1b   : > { %323 = vadd.xlane.f32.xlu0 %v322_v17  ;;  %1279 = vrcp.f32 %v1315_v16  ;;  %v598_v17 = vadd.f32 %v313_v44, %v311_v35  ;;  %v608_v11 = vadd.f32 %v607_v15, %v1473_v47 }
  0x1d   : > { %v599_v36 = vadd.f32 %v598_v17, %v1470_v46  ;;  %v609_v44 = vadd.f32 %v608_v11, %v372_v54  ;;  %v633_v11 = vld [vmem:[%s1890_s3 + $0x10] sm:$0xff] }
  0x1e   : > { %669 = vmatpush.xpose.msra.mxu3 %v633_v11 }
  0x1f   : > { %v610_v57 = vrot.slane %v609_v44, 4 }
  0x21   : > { %352 = vadd.xlane.f32.xlu1 %v351_v26  ;;  %v546_v26 = vadd.f32 %v545_v61, %v329_v22  ;;  %v1505_v40 = vpop.eup %1279 }
  0x22   : > { %332 = vadd.xlane.f32.xlu2 %v331_v27  ;;  %v555_v27 = vadd.f32 %v554_v62, %v330_v23  ;;  %v377_v45 = vmul.f32 256.0, %v1505_v40  ;;  %vm381_vm3 = vweird.f32 %v1505_v40 }
  0x23   : > { %349 = vadd.xlane.f32.xlu0 %v348_v28  ;;  %v564_v28 = vadd.f32 %v563_v63, %v343_v33  ;;  %v547_v35 = vrot.slane %v546_v26, 4  ;;  %v574_v33 = vrot.slane %v573_v25, 4 }
  0x24   : > { %v556_v22 = vrot.slane %v555_v27, 4  ;;  %v378_v61 = vsub.f32 1.0, %v377_v45 }
  0x25   : > { %v565_v23 = vrot.slane %v564_v28, 4  ;;  %v575_v51 = vadd.f32 %v574_v33, %v573_v25  ;;  %v1316_v33 = vmov 30.0  }
  0x26   : > { %v379_v16 = vmul.f32 %v1505_v40, %v378_v61  ;;  %1281 = vrcp.f32 %v1316_v33 }
  0x29   : > { %355 = vadd.xlane.f32.xlu1 %v354_v37  ;;  %v581_v37 = vadd.f32 %v580_v3, %v1450_v31 }
  0x2a   : > { %363 = vadd.xlane.f32.xlu2 %v362_v39 }
  0x2b   : > { %346 = vadd.xlane.f32.xlu0 %v345_v38  ;;  %v591_v38 = vadd.f32 %v590_v8, %v358_v43  ;;  %v582_v34 = vadd.f32 %v581_v37, %v357_v42  ;;  %v600_v43 = vadd.f32 %v599_v36, %v371_v53  ;;  %v576_v53 = vrot.slane %v575_v51, 2 }
  0x2c   : > { %v611_v8 = vadd.f32 %v610_v57, %v609_v44  ;;  %v380_v44 = vadd.f32 %v1505_v40, %v379_v16 }
  0x2d   : > { %v592_v41 = vrot.slane %v591_v38, 4  ;;  %v583_v52 = vrot.slane %v582_v34, 4  ;;  %v601_v60 = vrot.slane %v600_v43, 4 }
  0x2e   : > { %v612_v36 = vrot.slane %v611_v8, 2 }
  0x2f   : > { %v584_v63 = vadd.f32 %v583_v52, %v582_v34  ;;  %v602_v15 = vadd.f32 %v601_v60, %v600_v43  ;;  %v488_v34 = vld [vmem:[%s1889_s2 + $0x18] sm:$0x3f]  ;;  %v631_v43 = vld [vmem:[%s1890_s3] sm:$0xff] }
  0x30   : > { %1206 = vmatpush.xpose.msk.msrb.mxu1 %vm489_vm2, %v488_v34  ;;  %v613_v60 = vadd.f32 %v612_v36, %v611_v8  ;;  %670 = vmatpush.xpose.msra.mxu3 %v631_v43  ;;  %v632_v8 = vld [vmem:[%s1890_s3 + $0x8] sm:$0xff] }
  0x31   : > { %360 = vadd.xlane.f32.xlu1 %v359_v48  ;;  %v548_v48 = vadd.f32 %v547_v35, %v546_v26  ;;  %v585_v25 = vrot.slane %v584_v63, 2  ;;  %v416_v35 = vlaneseq }
  0x32   : > { %369 = vadd.xlane.f32.xlu2 %v368_v50  ;;  %v566_v50 = vadd.f32 %v565_v23, %v564_v28  ;;  %v577_v28 = vadd.f32 %v576_v53, %v575_v51  ;;  %v614_v33 = vrot.slane %v613_v60, 1 }
  0x33   : > { %366 = vadd.xlane.f32.xlu0 %v365_v49  ;;  %v557_v49 = vadd.f32 %v556_v22, %v555_v27  ;;  %v549_v42 = vrot.slane %v548_v48, 2  ;;  %v1542_v61 = vand.u32 127, %v416_v35 }
  0x34   : > { %v567_v54 = vrot.slane %v566_v50, 2  ;;  %v578_v52 = vrot.slane %v577_v28, 1 }
  0x35   : > { %v558_v62 = vrot.slane %v557_v49, 2  ;;  %v550_v17 = vadd.f32 %v549_v42, %v548_v48  ;;  %v634_v48 = vld [vmem:[%s1890_s3 + $0x18] sm:$0xff]  ;;  %v1573_v43 = vadd.s32 4294967280, %v1542_v61 }
  0x36   : > { %v568_v27 = vadd.f32 %v567_v54, %v566_v50  ;;  %689 = vmatpush.xpose.msrb.mxu3 %v634_v48  ;;  %v1282_v54 = vpop.eup %1281 }
  0x37   : > { %v559_v26 = vadd.f32 %v558_v62, %v557_v49  ;;  %v551_v45 = vrot.slane %v550_v17, 1  ;;  %v487_v49 = vld [vmem:[%s1889_s2 + $0x10] sm:$0xff]  ;;  %v1545_v62 = vsel %vm381_vm3, %v1505_v40, %v380_v44  ;;  %v486_v40 = vld [vmem:[%s1889_s2 + $0x8] sm:$0xff]  ;;  %v617_v11 = vmul.f32 30.0, %v1282_v54 }
  0x38   : > { %v569_v51 = vrot.slane %v568_v27, 1  ;;  %1207 = vmatpush.xpose.msk.msrb.mxu1 %vm489_vm2, %v487_v49  ;;  %vm621_vm7 = vweird.f32 %v1282_v54 }
  0x39   : > { %v560_v50 = vrot.slane %v559_v26, 1  ;;  %v552_v53 = vadd.f32 %v551_v45, %v550_v17  ;;  %v1581_v45 = vadd.s32 4294967272, %v1542_v61 }
  0x3a   : > { %v570_v16 = vadd.f32 %v569_v51, %v568_v27  ;;  %690 = vmatpush.xpose.msrb.mxu3 %v632_v8 }
  0x3b   : > { %374 = vadd.xlane.f32.xlu0 %v373_v55  ;;  %v593_v55 = vadd.f32 %v592_v41, %v591_v38  ;;  %v603_v41 = vrot.slane %v602_v15, 2 }
  0x3c   : > { %1208 = vmatpush.xpose.msk.msrb.mxu1 %vm489_vm2, %v486_v40 }
  0x3d   : > { %v594_v3 = vrot.slane %v593_v55, 2  ;;  %v604_v42 = vadd.f32 %v603_v41, %v602_v15  ;;  %v561_v15 = vadd.f32 %v560_v50, %v559_v26 }
  0x3f   : > { %v595_v37 = vadd.f32 %v594_v3, %v593_v55  ;;  %v586_v55 = vadd.f32 %v585_v25, %v584_v63  ;;  %v1551_v63 = vadd.s32 4294967288, %v1542_v61  ;;  %v579_v25 = vadd.f32 %v578_v52, %v577_v28 }
  0x40   : > { %v605_v27 = vrot.slane %v604_v42, 1  ;;  %v618_v28 = vsub.f32 1.0, %v617_v11 }
  0x41   : > { %v596_v57 = vrot.slane %v595_v37, 1  ;;  %v587_v36 = vrot.slane %v586_v55, 1 }
  0x42   : > { %v606_v52 = vadd.f32 %v605_v27, %v604_v42 }
  0x43   : > { %v588_v49 = vadd.f32 %v587_v36, %v586_v55 }
  0x84   : > { %v1497_v39 = vpop.xlane.xlu1 %335 }
  0x85   : > { %v1500_v24 = vpop.xlane.xlu2 %326  ;;  %v387_v3 = vmul.f32 %v1545_v62, %v1497_v39  ;;  %v597_v39 = vadd.f32 %v596_v57, %v595_v37 }
  0x86   : > { %v1502_v12 = vpop.xlane.xlu0 %320 }
  0x87   : > { %v1562_v34 = vmul.f32 %v1545_v62, %v1502_v12  ;;  %v431_v37 = vperm.slane %v387_v3, %v1542_v61 }
  0x89   : > { %v418_v48 = vperm.slane %v1562_v34, %v1542_v61 }
  0x8c   : > { %v339_v56 = vpop.xlane.xlu1 %338 }
  0x8d   : > { %v1508_v58 = vpop.xlane.xlu2 %341  ;;  %v388_v7 = vmul.f32 %v1545_v62, %v339_v56 }
  0x8e   : > { %v1510_v59 = vpop.xlane.xlu0 %323  ;;  %v1566_v44 = vmul.f32 %v1545_v62, %v1508_v58  ;;  %v1578_v58 = vmul.f32 %v1545_v62, %v1500_v24 }
  0x8f   : > { %v384_v26 = vmul.f32 %v1545_v62, %v1510_v59  ;;  %v432_v12 = vperm.slane %v388_v7, %v1551_v63  ;;  %v619_v59 = vmul.f32 %v1282_v54, %v618_v28  ;;  %v615_v7 = vadd.f32 %v614_v33, %v613_v60 }
  0x90   : > { %v434_v50 = vperm.slane %v1566_v44, %v1573_v43 }
  0x91   : > { %v420_v51 = vperm.slane %v384_v26, %v1551_v63  ;;  %v620_v24 = vadd.f32 %v1282_v54, %v619_v59  ;;  %v433_v57 = vsel %vm421_vm4, %v432_v12, %v431_v37 }
  0x93   : > { %v622_v36 = vsel %vm621_vm7, %v1282_v54, %v620_v24 }
  0x94   : > { %v1517_v38 = vpop.xlane.xlu1 %352  ;;  %v623_v44 = vmul.f32 %v622_v36, %v552_v53  ;;  %v625_v26 = vmul.f32 %v622_v36, %v570_v16  ;;  %v627_v27 = vmul.f32 %v622_v36, %v588_v49  ;;  %v629_v28 = vmul.f32 %v622_v36, %v606_v52 }
  0x95   : > { %v1522_v22 = vpop.xlane.xlu2 %332  ;;  %v392_v3 = vmul.f32 %v1545_v62, %v1517_v38  ;;  %v628_v12 = vmul.f32 %v622_v36, %v597_v39  ;;  %v630_v16 = vmul.f32 %v622_v36, %v615_v7 }
  0x96   : > { %v1524_v23 = vpop.xlane.xlu0 %349  ;;  %v386_v8 = vmul.f32 %v1545_v62, %v1522_v22  ;;  %v624_v22 = vmul.f32 %v622_v36, %v561_v15 }
  0x97   : > { %v391_v55 = vmul.f32 %v1545_v62, %v1524_v23  ;;  %v647_v23 = vsel %vm452_vm5, %v625_v26, %v623_v44  ;;  %v439_v54 = vperm.slane %v392_v3, %v1551_v63 }
  0x98   : > { %v648_v53 = vsel %vm454_vm6, %v627_v27, %v647_v23  ;;  %v709_v23 = vld [vmem:[%s1892_s5 + $0x68] sm:$0xff] }
  0x99   : > { %v649_v49 = vsel %vm456_vm9, %v629_v28, %v648_v53  ;;  %v726_v28 = vld [vmem:[%s1892_s5 + $0xf0] sm:$0xff] }
  0x9a   : > { %671 = vmatmul.f32.vlgmr.msra.gmra.mxu3 %v649_v49  ;;  %v722_v53 = vld [vmem:[%s1892_s5 + $0xd0] sm:$0xff]  ;;  %v720_v49 = vld [vmem:[%s1892_s5 + $0xc0] sm:$0xff] }
  0x9c   : > { %v356_v17 = vpop.xlane.xlu1 %355 }
  0x9d   : > { %v364_v41 = vpop.xlane.xlu2 %363  ;;  %v393_v40 = vmul.f32 %v1545_v62, %v356_v17  ;;  %v626_v17 = vmul.f32 %v622_v36, %v579_v25  ;;  %v435_v36 = vsel %vm425_vm8, %v434_v50, %v433_v57 }
  0x9e   : > { %v347_v56 = vpop.xlane.xlu0 %346  ;;  %v395_v38 = vmul.f32 %v1545_v62, %v364_v41 }
  0x9f   : > { %v390_v42 = vmul.f32 %v1545_v62, %v347_v56  ;;  %v438_v56 = vperm.slane %v391_v55, %v1542_v61  ;;  %v441_v41 = vperm.slane %v393_v40, %v1573_v43  ;;  %v650_v15 = vsel %vm452_vm5, %v626_v17, %v624_v22  ;;  %v710_v22 = vld [vmem:[%s1892_s5 + $0x70] sm:$0xff]  ;;  %v724_v17 = vld [vmem:[%s1892_s5 + $0xe0] sm:$0xff] }
  0xa0   : > { %v445_v25 = vperm.slane %v395_v38, %v1542_v61  ;;  %v651_v24 = vsel %vm454_vm6, %v628_v12, %v650_v15  ;;  %v422_v55 = vsel %vm421_vm4, %v420_v51, %v418_v48  ;;  %v428_v40 = vperm.slane %v386_v8, %v1581_v45  ;;  %v708_v12 = vld [vmem:[%s1892_s5 + $0x60] sm:$0xff] }
  0xa1   : > { %v436_v52 = vperm.slane %v390_v42, %v1581_v45  ;;  %v652_v7 = vsel %vm456_vm9, %v630_v16, %v651_v24  ;;  %v440_v61 = vsel %vm421_vm4, %v439_v54, %v438_v56  ;;  %v723_v54 = vld [vmem:[%s1892_s5 + $0xd8] sm:$0xff]  ;;  %v706_v16 = vld [vmem:[%s1892_s5 + $0x50] sm:$0xff]  ;;  %v704_v15 = vld [vmem:[%s1892_s5 + $0x40] sm:$0xff] }
  0xa2   : > { %691 = vmatmul.f32.vlgmr.msrb.gmra.mxu3 %v652_v7  ;;  %v707_v56 = vld [vmem:[%s1892_s5 + $0x58] sm:$0xff]  ;;  %v702_v7 = vld [vmem:[%s1892_s5 + $0x30] sm:$0xff] }
  0xa3   : > { %v437_v44 = vsel %vm429_vm10, %v436_v52, %v435_v36  ;;  %v703_v24 = vld [vmem:[%s1892_s5 + $0x38] sm:$0xff]  ;;  %v700_v36 = vld [vmem:[%s1892_s5 + $0x20] sm:$0xff] }
  0xa4   : > { %v361_v11 = vpop.xlane.xlu1 %360 }
  0xa5   : > { %v370_v33 = vpop.xlane.xlu2 %369  ;;  %v394_v37 = vmul.f32 %v1545_v62, %v361_v11  ;;  %v424_v11 = vperm.slane %v1578_v58, %v1573_v43 }
  0xa6   : > { %v367_v34 = vpop.xlane.xlu0 %366  ;;  %v397_v59 = vmul.f32 %v1545_v62, %v370_v33  ;;  %v711_v33 = vld [vmem:[%s1892_s5 + $0x78] sm:$0xff] }
  0xa7   : > { %v396_v60 = vmul.f32 %v1545_v62, %v367_v34  ;;  %v443_v3 = vperm.slane %v394_v37, %v1581_v45  ;;  %v442_v34 = vsel %vm425_vm8, %v441_v41, %v440_v61  ;;  %v426_v51 = vsel %vm425_vm8, %v424_v11, %v422_v55  ;;  %1212 = vmatpush.xpose.msk.msra.mxu0 %vm734_vm11, %v711_v33  ;;  %v725_v37 = vld [vmem:[%s1892_s5 + $0xe8] sm:$0xff]  ;;  %v716_v11 = vld [vmem:[%s1892_s5 + $0xa0] sm:$0xff] }
  0xa8   : > { %v430_v58 = vsel %vm429_vm10, %v428_v40, %v426_v51  ;;  %v721_v41 = vld [vmem:[%s1892_s5 + $0xc8] sm:$0xff] }
  0xa9   : > { %v446_v39 = vperm.slane %v396_v60, %v1551_v63  ;;  %v448_v63 = vperm.slane %v397_v59, %v1573_v43  ;;  %v444_v8 = vsel %vm429_vm10, %v443_v3, %v442_v34  ;;  %v453_v43 = vsel %vm452_vm5, %v437_v44, %v430_v58  ;;  %v705_v59 = vld [vmem:[%s1892_s5 + $0x48] sm:$0xff]  ;;  %v718_v3 = vld [vmem:[%s1892_s5 + $0xb0] sm:$0xff]  ;;  %v1278_v34 = vld [vmem:[%s1891_s4] ss:$0 sm:$0xff] }
  0xaa   : > { %v455_v38 = vsel %vm454_vm6, %v444_v8, %v453_v43  ;;  %v717_v55 = vld [vmem:[%s1892_s5 + $0xa8] sm:$0xff]  ;;  %v714_v44 = vld [vmem:[%s1892_s5 + $0x90] sm:$0xff]  ;;  %v696_v43 = vld [vmem:[%s1892_s5] sm:$0xff] }
  0xab   : > { %v447_v26 = vsel %vm421_vm4, %v446_v39, %v445_v25  ;;  %1213 = vmatpush.xpose.msk.msra.mxu0 %vm734_vm11, %v710_v22  ;;  %v719_v39 = vld [vmem:[%s1892_s5 + $0xb8] sm:$0xff]  ;;  %v701_v40 = vld [vmem:[%s1892_s5 + $0x28] sm:$0xff] }
  0xac   : > { %v449_v57 = vsel %vm425_vm8, %v448_v63, %v447_v26  ;;  %v715_v63 = vld [vmem:[%s1892_s5 + $0x98] sm:$0xff]  ;;  %v698_v26 = vld [vmem:[%s1892_s5 + $0x10] sm:$0xff]  ;;  %v713_v8 = vld [vmem:[%s1892_s5 + $0x88] sm:$0xff] }
  0xad   : > { %v697_v58 = vld [vmem:[%s1892_s5 + $0x8] sm:$0xff] }
  0xae   : > { %v375_v42 = vpop.xlane.xlu0 %374 }
  0xaf   : > { %v398_v48 = vmul.f32 %v1545_v62, %v375_v42  ;;  %v485_v62 = vld [vmem:[%s1889_s2] sm:$0xff]  ;;  %1214 = vmatpush.xpose.msk.msra.mxu0 %vm734_vm11, %v709_v23  ;;  %v699_v42 = vld [vmem:[%s1892_s5 + $0x18] sm:$0xff] }
  0xb0   : > { %1209 = vmatpush.xpose.msk.msrb.mxu1 %vm489_vm2, %v485_v62 }
  0xb1   : > { %v450_v50 = vperm.slane %v398_v48, %v1581_v45  ;;  %v727_v45 = vld [vmem:[%s1892_s5 + $0xf8] sm:$0xff] }
  0xb2   : > { %1229 = vmatpush.xpose.msk.msra.mxu2 %vm734_vm11, %v727_v45 }
  0xb3   : > { %v451_v27 = vsel %vm429_vm10, %v450_v50, %v449_v57  ;;  %1215 = vmatpush.xpose.msk.msra.mxu0 %vm734_vm11, %v708_v12  ;;  %v712_v57 = vld [vmem:[%s1892_s5 + $0x80] sm:$0xff] }
  0xb4   : > { %v457_v60 = vsel %vm456_vm9, %v451_v27, %v455_v38  ;;  %v1774_v38 = vshrl.u32 %v416_v35, 7 }
  0xb5   : > { %1205 = vmatmul.msk.f32.vlgmr.msra.gmra.mxu1 %vm458_vm1, %v457_v60 }
  0xb6   : > { %1230 = vmatpush.xpose.msk.msra.mxu2 %vm734_vm11, %v726_v28  ;;  %1262 = vset.pattern.permute.xlu1 %v1774_v38  ;;  %v1778_v60 = vadd.s32 16, %v1774_v38  ;;  %v1781_v62 = vadd.s32 8, %v1774_v38 }
  0xb7   : > { %1216 = vmatpush.xpose.msk.msra.mxu0 %vm734_vm11, %v707_v56 }
  0xb8   : > { %1264 = vset.pattern.permute.xlu0 %v1778_v60  ;;  %1263 = vset.pattern.permute.xlu2 %v1781_v62 }
  0xba   : > { %1231 = vmatpush.xpose.msk.msra.mxu2 %vm734_vm11, %v725_v37 }
  0xbb   : > { %1217 = vmatpush.xpose.msk.msra.mxu0 %vm734_vm11, %v706_v16 }
  0xbe   : > { %1232 = vmatpush.xpose.msk.msra.mxu2 %vm734_vm11, %v724_v17 }
  0xbf   : > { %1218 = vmatpush.xpose.msk.msra.mxu0 %vm734_vm11, %v705_v59 }
  0xc2   : > { %1233 = vmatpush.xpose.msk.msra.mxu2 %vm734_vm11, %v723_v54 }
  0xc3   : > { %1219 = vmatpush.xpose.msk.msra.mxu0 %vm734_vm11, %v704_v15 }
  0xc6   : > { %1234 = vmatpush.xpose.msk.msra.mxu2 %vm734_vm11, %v722_v53 }
  0xc7   : > { %1220 = vmatpush.xpose.msk.msra.mxu0 %vm734_vm11, %v703_v24 }
  0xca   : > { %1235 = vmatpush.xpose.msk.msra.mxu2 %vm734_vm11, %v721_v41 }
  0xcb   : > { %1221 = vmatpush.xpose.msk.msra.mxu0 %vm734_vm11, %v702_v7 }
  0xce   : > { %1236 = vmatpush.xpose.msk.msra.mxu2 %vm734_vm11, %v720_v49  ;;  %v1786_v49 = vadd.s32 24, %v1774_v38 }
  0xcf   : > { %1222 = vmatpush.xpose.msk.msra.mxu0 %vm734_vm11, %v701_v40 }
  0xd2   : > { %1237 = vmatpush.xpose.msk.msra.mxu2 %vm734_vm11, %v719_v39 }
  0xd3   : > { %1223 = vmatpush.xpose.msk.msra.mxu0 %vm734_vm11, %v700_v36 }
  0xd6   : > { %1238 = vmatpush.xpose.msk.msra.mxu2 %vm734_vm11, %v718_v3 }
  0xd7   : > { %1224 = vmatpush.xpose.msk.msra.mxu0 %vm734_vm11, %v699_v42 }
  0xda   : > { %1239 = vmatpush.xpose.msk.msra.mxu2 %vm734_vm11, %v717_v55 }
  0xdb   : > { %1225 = vmatpush.xpose.msk.msra.mxu0 %vm734_vm11, %v698_v26 }
  0xde   : > { %1240 = vmatpush.xpose.msk.msra.mxu2 %vm734_vm11, %v716_v11 }
  0xdf   : > { %1226 = vmatpush.xpose.msk.msra.mxu0 %vm734_vm11, %v697_v58 }
  0xe2   : > { %1241 = vmatpush.xpose.msk.msra.mxu2 %vm734_vm11, %v715_v63 }
  0xe3   : > { %1227 = vmatpush.xpose.msk.msra.mxu0 %vm734_vm11, %v696_v43 }
  0xe6   : > { %1242 = vmatpush.xpose.msk.msra.mxu2 %vm734_vm11, %v714_v44 }
  0xea   : > { %1243 = vmatpush.xpose.msk.msra.mxu2 %vm734_vm11, %v713_v8 }
  0xee   : > { %1244 = vmatpush.xpose.msk.msra.mxu2 %vm734_vm11, %v712_v57 }
 0x11d   : > { %v672_v61 = vpop.f32.mrf.mxu3 }
 0x11e   : > { %v673_v48 = vadd.f32 %v1278_v34, %v672_v61 }
 0x125   : > { %v692_v51 = vpop.f32.mrf.mxu3 }
 0x126   : > { %v693_v50 = vadd.f32 %v692_v51, %v673_v48 }
 0x128   : > { %v695_v27 = vmax.f32 %v693_v50, 0.0 }
 0x12a   : > { %1245 = vmatmul.msk.f32.vlgmr.msra.gmra.mxu2 %vm734_vm11, %v695_v27  ;;  %1228 = vmatmul.msk.f32.vlgmr.msra.gmra.mxu0 %vm734_vm11, %v695_v27  ;;  %vm1015_vm11 = vcmask 1040384  }
 0x132   : > { %v481_v52 = vpop.f32.mrf.mxu1 }
 0x133   : > { %v484_v25 = vmax.f32 %v481_v52, 0.0 }
 0x135   : > { %1210 = vmatmul.msk.f32.vlgmr.msrb.gmra.mxu1 %vm489_vm2, %v484_v25  ;;  %v728_v25 = vld [vmem:[%s1893_s6] sm:$0x3] }
 0x136   : > { %v731_v39 = vperm.slane %v728_v25, 1  ;;  %v730_v7 = vperm.slane %v728_v25, 0 }
 0x1a7   : > { %v851_v55 = vpop.f32.mrf.mxu0 }
 0x1a8   : > { %v852_v36 = vadd.f32 %v851_v55, %v730_v7 }
 0x1aa   : > { %v1246_v61 = vmul.f32 -1.442695, %v852_v36 }
 0x1ad   : > { %v871_v24 = vpop.f32.mrf.mxu2 }
 0x1ae   : > { %v872_v3 = vadd.f32 %v871_v24, %v731_v39 }
 0x1b0   : > { %v1247_v11 = vmul.f32 -1.442695, %v872_v3 }
 0x1b2   : > { %v522_v45 = vpop.f32.mrf.mxu1 }
 0x1b3   : > { %v1211_v33 = vmul.f32 -1.442695, %v522_v45 }
 0x1b5   : > { %1283 = vpow2.f32 %v1211_v33 }
 0x1bb   : > { %v1284_v28 = vpop.eup %1283 }
 0x1bc   : > { %v528_v22 = vadd.f32 1.0, %v1284_v28 }
 0x1be   : > { %1285 = vrcp.f32 %v528_v22  ;;  %v540_v17 = vand.u32 2147483648, %v528_v22  ;;  %v538_v54 = vand.u32 2147483647, %v528_v22  ;;  %vm534_vm13 = vweird.f32 %v528_v22 }
 0x1bf   : > { %1287 = vpow2.f32 %v1247_v11 }
 0x1c0   : > { %v541_v53 = vor.u32 1.1754944e-38, %v540_v17  ;;  %vm539_vm15 = vcmp.eq.f32.partialorder %v538_v54, 8.507059e+37  ;;  %1289 = vpow2.f32 %v1246_v61 }
 0x1c4   : > { %v1286_v35 = vpop.eup %1285 }
 0x1c5   : > { %v530_v37 = vmul.f32 %v1286_v35, %v528_v22  ;;  %vm535_vm12 = vweird.f32 %v1286_v35  ;;  %v1288_v63 = vpop.eup %1287 }
 0x1c6   : > { %vm536_vm14 = vmor %vm534_vm13, %vm535_vm12  ;;  %v881_v42 = vadd.f32 1.0, %v1288_v63  ;;  %v1290_v34 = vpop.eup %1289 }
 0x1c7   : > { %v531_v23 = vsub.f32 1.0, %v530_v37  ;;  %v880_v44 = vadd.f32 1.0, %v1290_v34 }
 0x1c8   : > { %1291 = vrcp.f32 %v881_v42  ;;  %vm902_vm0 = vweird.f32 %v881_v42  ;;  %v908_v43 = vand.u32 2147483648, %v881_v42  ;;  %v906_v45 = vand.u32 2147483647, %v881_v42 }
 0x1c9   : > { %v532_v12 = vmul.f32 %v1286_v35, %v531_v23  ;;  %1293 = vrcp.f32 %v880_v44  ;;  %vm887_vm3 = vweird.f32 %v880_v44  ;;  %v893_v28 = vand.u32 2147483648, %v880_v44 }
 0x1ca   : > { %vm907_vm7 = vcmp.eq.f32.partialorder %v906_v45, 8.507059e+37 }
 0x1cb   : > { %v533_v56 = vadd.f32 %v1286_v35, %v532_v12  ;;  %v894_v23 = vor.u32 1.1754944e-38, %v893_v28 }
 0x1cd   : > { %v537_v16 = vsel %vm536_vm14, %v1286_v35, %v533_v56  ;;  %v891_v35 = vand.u32 2147483647, %v880_v44 }
 0x1ce   : > { %v542_v41 = vsel %vm539_vm15, %v541_v53, %v537_v16  ;;  %v1292_v26 = vpop.eup %1291 }
 0x1cf   : > { %v912_v59 = vperm.slane %v542_v41, 0  ;;  %v937_v15 = vperm.slane %v542_v41, 1  ;;  %v962_v52 = vperm.slane %v542_v41, 2  ;;  %v1796_v40 = vperm.slane %v542_v41, 3  ;;  %v1294_v51 = vpop.eup %1293 }
 0x1d0   : > { %v898_v48 = vmul.f32 %v1292_v26, %v881_v42  ;;  %v883_v58 = vmul.f32 %v1294_v51, %v880_v44  ;;  %vm903_vm1 = vweird.f32 %v1292_v26  ;;  %vm888_vm4 = vweird.f32 %v1294_v51 }
 0x1d1   : > { %929 = vperm.xlu0 %1264, %v912_v59   ;;  %923 = vperm.xlu2 %1263, %v912_v59   ;;  %vm904_vm2 = vmor %vm902_vm0, %vm903_vm1  ;;  %vm892_vm10 = vcmp.eq.f32.partialorder %v891_v35, 8.507059e+37 }
 0x1d2   : > { %917 = vperm.xlu1 %1262, %v912_v59   ;;  %v899_v8 = vsub.f32 1.0, %v898_v48  ;;  %v884_v57 = vsub.f32 1.0, %v883_v58  ;;  %vm889_vm8 = vmor %vm887_vm3, %vm888_vm4 }
 0x1d4   : > { %v900_v50 = vmul.f32 %v1292_v26, %v899_v8  ;;  %v885_v33 = vmul.f32 %v1294_v51, %v884_v57 }
 0x1d6   : > { %v901_v27 = vadd.f32 %v1292_v26, %v900_v50 }
 0x1d8   : > { %v905_v22 = vsel %vm904_vm2, %v1292_v26, %v901_v27 }
 0x1d9   : > { %1270 = vset.pattern.permute.xlu0 %v1781_v62  ;;  %1265 = vset.pattern.permute.xlu2 %v1786_v49 }
 0x1da   : > { %942 = vperm.xlu1 %1262, %v937_v15  }
 0x1e1   : > { %973 = vperm.xlu0 %1270, %v962_v52   ;;  %935 = vperm.xlu2 %1265, %v912_v59  }
 0x1e2   : > { %1267 = vset.pattern.permute.xlu1 %v1778_v60 }
 0x1e9   : > { %1275 = vset.pattern.permute.xlu0 %v1778_v60  ;;  %1266 = vset.pattern.permute.xlu2 %v1781_v62 }
 0x1ea   : > { %954 = vperm.xlu1 %1267, %v937_v15  }
 0x1f1   : > { %1004 = vperm.xlu0 %1275, %v1796_v40   ;;  %948 = vperm.xlu2 %1266, %v937_v15  }
 0x1f2   : > { %1269 = vset.pattern.permute.xlu1 %v1774_v38 }
 0x1f9   : > { %1268 = vset.pattern.permute.xlu2 %v1786_v49  ;;  %1277 = vset.pattern.permute.xlu0 %v1786_v49 }
 0x1fa   : > { %967 = vperm.xlu1 %1269, %v962_v52  }
 0x201   : > { %960 = vperm.xlu2 %1268, %v937_v15  }
 0x202   : > { %1272 = vset.pattern.permute.xlu1 %v1786_v49 }
 0x209   : > { %1271 = vset.pattern.permute.xlu2 %v1778_v60  ;;  %v909_v60 = vor.u32 1.1754944e-38, %v908_v43 }
 0x20a   : > { %985 = vperm.xlu1 %1272, %v962_v52  }
 0x20b   : > { %v910_v37 = vsel %vm907_vm7, %v909_v60, %v905_v22 }
 0x20c   : > { %v1014_v12 = vrot.slane %v910_v37, 7 }
 0x211   : > { %979 = vperm.xlu2 %1271, %v962_v52  }
 0x212   : > { %1274 = vset.pattern.permute.xlu1 %v1781_v62  ;;  %v886_v62 = vadd.f32 %v1294_v51, %v885_v33 }
 0x214   : > { %v890_v17 = vsel %vm889_vm8, %v1294_v51, %v886_v62 }
 0x215   : > { %v895_v54 = vsel %vm892_vm10, %v894_v23, %v890_v17 }
 0x216   : > { %v1017_v7 = vsel %vm452_vm5, %v895_v54, %v1014_v12  ;;  %v1019_v48 = vsel %vm454_vm6, %v895_v54, %v1014_v12 }
 0x217   : > { %v1018_v36 = vrot.slane %v1017_v7, 1  ;;  %v1020_v58 = vrot.slane %v1019_v48, 2 }
 0x219   : > { %1273 = vset.pattern.permute.xlu2 %v1774_v38  ;;  %v1016_v38 = vsel %vm1015_vm11, %v895_v54, %v1014_v12  ;;  %v1025_v44 = vperm.slane %v1018_v36, 0  ;;  %v1026_v26 = vperm.slane %v1018_v36, 1  ;;  %v1027_v45 = vperm.slane %v1020_v58, 0 }
 0x21a   : > { %998 = vperm.xlu1 %1274, %v1796_v40   ;;  %v1023_v56 = vperm.slane %v1016_v38, 0  ;;  %v1024_v53 = vperm.slane %v1016_v38, 1  ;;  %v1028_v33 = vperm.slane %v1020_v58, 1  ;;  %v1296_v38 = vld [vmem:[%s1373_s30 + $0x68] sm:$0xff] }
 0x221   : > { %992 = vperm.xlu2 %1273, %v1796_v40  }
 0x229   : > { %1276 = vset.pattern.permute.xlu2 %v1786_v49 }
 0x22b   : > { %v924_v16 = vpop.permute.xlu2 %923 }
 0x22c   : > { %v1041_v41 = vadd.f32 %v1023_v56, %v924_v16  ;;  %v1042_v59 = vadd.f32 %v1024_v53, %v924_v16 }
 0x22e   : > { %v1073_v15 = vmul.f32 %v1041_v41, %v1412_v13  ;;  %v1074_v52 = vmul.f32 %v1042_v59, %v1415_v14  ;;  %v1021_v13 = vsel %vm456_vm9, %v895_v54, %v1014_v12  ;;  %v1295_v54 = vld [vmem:[%s1373_s30 + $0x60] sm:$0xff] }
 0x230   : > { %1105 = vst [vmem:[%s1814_s20 + $0x10] sm:$0xff] %v1073_v15 }
 0x231   : > { %1106 = vst [vmem:[%s1814_s20 + $0x18] sm:$0xff] %v1074_v52  ;;  %1010 = vperm.xlu2 %1276, %v1796_v40  }
 0x23b   : > { %v936_v49 = vpop.permute.xlu2 %935 }
 0x23c   : > { %v1045_v25 = vadd.f32 %v1023_v56, %v936_v49  ;;  %v1046_v39 = vadd.f32 %v1024_v53, %v936_v49 }
 0x23e   : > { %v1077_v24 = vmul.f32 %v1045_v25, %v1424_v18  ;;  %v1078_v3 = vmul.f32 %v1046_v39, %v1427_v19 }
 0x240   : > { %1109 = vst [vmem:[%s1814_s20 + $0x30] sm:$0x3f] %v1077_v24 }
 0x241   : > { %1110 = vst [vmem:[%s1814_s20 + $0x38] sm:$0x3f] %v1078_v3 }
 0x243   : > { %v930_v14 = vpop.permute.xlu0 %929 }
 0x244   : > { %v1043_v55 = vadd.f32 %v1023_v56, %v930_v14  ;;  %v1044_v40 = vadd.f32 %v1024_v53, %v930_v14  ;;  %v918_v11 = vpop.permute.xlu1 %917 }
 0x245   : > { %v1039_v61 = vadd.f32 %v1023_v56, %v918_v11  ;;  %v1040_v63 = vadd.f32 %v1024_v53, %v918_v11 }
 0x246   : > { %v1075_v18 = vmul.f32 %v1043_v55, %v1382_v2  ;;  %v1076_v19 = vmul.f32 %v1044_v40, %v1387_v4  ;;  %v1298_v40 = vld [vmem:[%s1373_s30 + $0x88] sm:$0xff] }
 0x247   : > { %v1071_v42 = vmul.f32 %v1039_v61, %v1390_v5  ;;  %v1072_v34 = vmul.f32 %v1040_v63, %v1393_v6  ;;  %v1299_v63 = vld [vmem:[%s1373_s30 + $0xc0] sm:$0xff] }
 0x248   : > { %1107 = vst [vmem:[%s1814_s20 + $0x20] sm:$0xff] %v1075_v18 }
 0x249   : > { %1108 = vst [vmem:[%s1814_s20 + $0x28] sm:$0xff] %v1076_v19  ;;  %v1300_v19 = vld [vmem:[%s1373_s30 + $0xc8] sm:$0xff] }
 0x24a   : > { %1103 = vst [vmem:[%s1814_s20] sm:$0xff] %v1071_v42 }
 0x24b   : > { %1104 = vst [vmem:[%s1814_s20 + $0x8] sm:$0xff] %v1072_v34  ;;  %v949_v51 = vpop.permute.xlu2 %948  ;;  %v1301_v34 = vld [vmem:[%s1373_s30 + $0xb0] sm:$0x3f] }
 0x24c   : > { %v1049_v2 = vadd.f32 %v1025_v44, %v949_v51  ;;  %v1050_v8 = vadd.f32 %v1026_v26, %v949_v51  ;;  %v943_v4 = vpop.permute.xlu1 %942 }
 0x24d   : > { %v1047_v5 = vadd.f32 %v1025_v44, %v943_v4  ;;  %v1048_v50 = vadd.f32 %v1026_v26, %v943_v4 }
 0x24e   : > { %v1081_v6 = vmul.f32 %v1049_v2, %v1400_v9  ;;  %v1082_v57 = vmul.f32 %v1050_v8, %v1403_v10 }
 0x24f   : > { %v1079_v43 = vmul.f32 %v1047_v5, %v1376_v0  ;;  %v1080_v27 = vmul.f32 %v1048_v50, %v1379_v1  ;;  %v1303_v50 = vld [vmem:[%s1373_s30 + $0xf0] sm:$0x3f] }
 0x250   : > { %1113 = vst [vmem:[%s1814_s20 + $0x50] sm:$0xff] %v1081_v6 }
 0x251   : > { %1114 = vst [vmem:[%s1814_s20 + $0x58] sm:$0xff] %v1082_v57  ;;  %v1304_v57 = vld [vmem:[%s1373_s30 + $0xf8] sm:$0x3f] }
 0x252   : > { %1111 = vst [vmem:[%s1814_s20 + $0x40] sm:$0xff] %v1079_v43 }
 0x253   : > { %1112 = vst [vmem:[%s1814_s20 + $0x48] sm:$0xff] %v1080_v27  ;;  %v974_v60 = vpop.permute.xlu0 %973  ;;  %v1305_v27 = vld [vmem:[%s1373_s30 + $0xd0] sm:$0xff] }
 0x254   : > { %v1057_v28 = vadd.f32 %v1027_v45, %v974_v60  ;;  %v1058_v22 = vadd.f32 %v1028_v33, %v974_v60 }
 0x256   : > { %v1089_v9 = vmul.f32 %v1057_v28, %v1430_v20  ;;  %v1090_v10 = vmul.f32 %v1058_v22, %v1433_v21  ;;  %v1022_v21 = vrot.slane %v1021_v13, 3  ;;  %v1297_v13 = vld [vmem:[%s1373_s30 + $0x80] sm:$0xff] }
 0x258   : > { %1121 = vst [vmem:[%s1814_s20 + $0x90] sm:$0xff] %v1089_v9  ;;  %v1029_v53 = vperm.slane %v1022_v21, 0  ;;  %v1030_v16 = vperm.slane %v1022_v21, 1 }
 0x259   : > { %1122 = vst [vmem:[%s1814_s20 + $0x98] sm:$0xff] %v1090_v10 }
 0x25b   : > { %v961_v0 = vpop.permute.xlu2 %960 }
 0x25c   : > { %v1053_v1 = vadd.f32 %v1025_v44, %v961_v0  ;;  %v1054_v62 = vadd.f32 %v1026_v26, %v961_v0  ;;  %v955_v35 = vpop.permute.xlu1 %954 }
 0x25d   : > { %v1051_v37 = vadd.f32 %v1025_v44, %v955_v35  ;;  %v1052_v23 = vadd.f32 %v1026_v26, %v955_v35  ;;  %v1302_v26 = vld [vmem:[%s1373_s30 + $0xb8] sm:$0x3f] }
 0x25e   : > { %v1085_v17 = vmul.f32 %v1053_v1, %v1444_v29  ;;  %v1086_v12 = vmul.f32 %v1054_v62, %v1447_v30 }
 0x25f   : > { %v1083_v20 = vmul.f32 %v1295_v54, %v1051_v37  ;;  %v1084_v56 = vmul.f32 %v1296_v38, %v1052_v23 }
 0x260   : > { %1117 = vst [vmem:[%s1814_s20 + $0x70] sm:$0x3f] %v1085_v17 }
 0x261   : > { %1118 = vst [vmem:[%s1814_s20 + $0x78] sm:$0x3f] %v1086_v12 }
 0x262   : > { %1115 = vst [vmem:[%s1814_s20 + $0x60] sm:$0xff] %v1083_v20 }
 0x263   : > { %1116 = vst [vmem:[%s1814_s20 + $0x68] sm:$0xff] %v1084_v56  ;;  %v1005_v41 = vpop.permute.xlu0 %1004 }
 0x264   : > { %v1067_v29 = vadd.f32 %v1029_v53, %v1005_v41  ;;  %v1068_v49 = vadd.f32 %v1030_v16, %v1005_v41 }
 0x266   : > { %v1099_v7 = vmul.f32 %v1067_v29, %v1470_v46  ;;  %v1100_v55 = vmul.f32 %v1068_v49, %v1473_v47 }
 0x268   : > { %1131 = vst [vmem:[%s1814_s20 + $0xe0] sm:$0xff] %v1099_v7 }
 0x269   : > { %1132 = vst [vmem:[%s1814_s20 + $0xe8] sm:$0xff] %v1100_v55 }
 0x26b   : > { %v980_v59 = vpop.permute.xlu2 %979 }
 0x26c   : > { %v1059_v15 = vadd.f32 %v1027_v45, %v980_v59  ;;  %v1060_v30 = vadd.f32 %v1028_v33, %v980_v59  ;;  %v968_v52 = vpop.permute.xlu1 %967 }
 0x26d   : > { %v1055_v25 = vadd.f32 %v1027_v45, %v968_v52  ;;  %v1056_v39 = vadd.f32 %v1028_v33, %v968_v52 }
 0x26e   : > { %v1091_v24 = vmul.f32 %v1059_v15, %v1450_v31  ;;  %v1092_v3 = vmul.f32 %v1060_v30, %v1453_v32 }
 0x26f   : > { %v1087_v14 = vmul.f32 %v1297_v13, %v1055_v25  ;;  %v1088_v11 = vmul.f32 %v1298_v40, %v1056_v39 }
 0x270   : > { %1123 = vst [vmem:[%s1814_s20 + $0xa0] sm:$0xff] %v1091_v24 }
 0x271   : > { %1124 = vst [vmem:[%s1814_s20 + $0xa8] sm:$0xff] %v1092_v3 }
 0x272   : > { %1119 = vst [vmem:[%s1814_s20 + $0x80] sm:$0xff] %v1087_v14 }
 0x273   : > { %1120 = vst [vmem:[%s1814_s20 + $0x88] sm:$0xff] %v1088_v11 }
 0x27b   : > { %v993_v31 = vpop.permute.xlu2 %992 }
 0x27c   : > { %v1063_v32 = vadd.f32 %v1029_v53, %v993_v31  ;;  %v1064_v46 = vadd.f32 %v1030_v16, %v993_v31  ;;  %v986_v36 = vpop.permute.xlu1 %985 }
 0x27d   : > { %v1061_v61 = vadd.f32 %v1027_v45, %v986_v36  ;;  %v1062_v47 = vadd.f32 %v1028_v33, %v986_v36  ;;  %v1306_v33 = vld [vmem:[%s1373_s30 + $0xd8] sm:$0xff] }
 0x27e   : > { %v1095_v18 = vmul.f32 %v1299_v63, %v1063_v32  ;;  %v1096_v42 = vmul.f32 %v1300_v19, %v1064_v46 }
 0x27f   : > { %v1093_v44 = vmul.f32 %v1301_v34, %v1061_v61  ;;  %v1094_v48 = vmul.f32 %v1302_v26, %v1062_v47 }
 0x280   : > { %1127 = vst [vmem:[%s1814_s20 + $0xc0] sm:$0xff] %v1095_v18 }
 0x281   : > { %1128 = vst [vmem:[%s1814_s20 + $0xc8] sm:$0xff] %v1096_v42 }
 0x282   : > { %1125 = vst [vmem:[%s1814_s20 + $0xb0] sm:$0x3f] %v1093_v44 }
 0x283   : > { %1126 = vst [vmem:[%s1814_s20 + $0xb8] sm:$0x3f] %v1094_v48 }
 0x28b   : > { %v1011_v51 = vpop.permute.xlu2 %1010 }
 0x28c   : > { %v1069_v2 = vadd.f32 %v1029_v53, %v1011_v51  ;;  %v1070_v8 = vadd.f32 %v1030_v16, %v1011_v51  ;;  %v999_v4 = vpop.permute.xlu1 %998 }
 0x28d   : > { %v1065_v58 = vadd.f32 %v1029_v53, %v999_v4  ;;  %v1066_v5 = vadd.f32 %v1030_v16, %v999_v4 }
 0x28e   : > { %v1101_v6 = vmul.f32 %v1303_v50, %v1069_v2  ;;  %v1102_v43 = vmul.f32 %v1304_v57, %v1070_v8 }
 0x28f   : > { %v1097_v45 = vmul.f32 %v1305_v27, %v1065_v58  ;;  %v1098_v60 = vmul.f32 %v1306_v33, %v1066_v5 }
 0x290   : > { %1133 = vst [vmem:[%s1814_s20 + $0xf0] sm:$0x3f] %v1101_v6 }
 0x291   : > { %1134 = vst [vmem:[%s1814_s20 + $0xf8] sm:$0x3f] %v1102_v43 }
 0x292   : > { %1129 = vst [vmem:[%s1814_s20 + $0xd0] sm:$0xff] %v1097_v45 }
 0x293   : > { %1130 = vst [vmem:[%s1814_s20 + $0xd8] sm:$0xff] %v1098_v60 }
 0x294 PF: > { %s17_s24 = sadd.s32 1, %s1313_s24  }
 0x295   : > { %p14_p4 = scmp.ge.s32.totalorder %s17_s24, 4  }
 0x297   :  { %16 = sbr.rel (!%p14_p4) target bundleno = 1 (0x1), region = 78 }

</bundles_post_ra>
